<compile_context>
chip_gen: v5e
topology: v5e:2x2
jax: 0.10.0
libtpu: 0.0.40
codegen_flags: <defaults>
</compile_context>

<pallas_src>
import functools
from itertools import permutations

import jax
import jax.numpy as jnp
from jax import lax
from jax.experimental import pallas as pl
from jax.experimental.pallas import tpu as pltpu


def _exact_grad_kernel(log_theta_ref,   # SMEM (d,)          scores
                       piT_ref,         # VMEM (d, TN) int32 piT[i, p] = pi[p, i]
                       f_ref,           # VMEM (1, TN) f32   f(permutation) per permutation
                       grad_ref,        # VMEM (1, d)        accumulated d loss / d log_theta
                       exp_ref,         # VMEM (1, 1)        accumulated sum_p exp(lp_p) * f_p
                       *, d, tn):
    @pl.when(pl.program_id(0) == 0)
    def _init():
        grad_ref[...] = jnp.zeros_like(grad_ref)
        exp_ref[...] = jnp.zeros_like(exp_ref)

    idx = piT_ref[...]                                      # (d, TN) int32

    # ---- gather: s[i, p] = log_theta[pi[p, i]] (d compare+selects on single-vreg tiles) ----
    s = jnp.zeros((d, tn), jnp.float32)
    for k in range(d):
        s = jnp.where(idx == k, log_theta_ref[k], s)

    # ---- Plackett-Luce log-prob: reverse cumulative logsumexp (stabilized) ----
    m = jnp.max(s, axis=0, keepdims=True)                   # (1, TN)
    e = jnp.exp(s - m)                                      # (d, TN)

    row = lax.broadcasted_iota(jnp.int32, (d, d), 0)
    col = lax.broadcasted_iota(jnp.int32, (d, d), 1)
    t_ge = (col >= row).astype(jnp.float32)                 # c[i]       = sum_{j >= i} e[j]
    t_le = (col <= row).astype(jnp.float32)                 # cum_inv[i] = sum_{j <= i} 1/c[j]

    c = jnp.dot(t_ge, e, preferred_element_type=jnp.float32)            # (d, TN) on MXU
    logprob = jnp.sum(s - (jnp.log(c) + m), axis=0, keepdims=True)      # (1, TN)

    w = jnp.exp(logprob) * f_ref[...]                       # exp(logprob).detach() * f_all
    exp_ref[...] += jnp.sum(w, keepdims=True)               # (1, 1)

    # ---- analytic score: d logprob / d s[i, p] = 1 - e[i, p] * sum_{j <= i} 1 / c[j, p] ----
    inv_c = pl.reciprocal(c, approx=True)                   # EUP slot (otherwise idle)
    inv_c = inv_c * (2.0 - c * inv_c)                       # one Newton step -> full precision
    cum_inv = jnp.dot(t_le, inv_c, preferred_element_type=jnp.float32)  # (d, TN) on MXU
    wg = w * (1.0 - e * cum_inv)                            # (d, TN)

    # ---- scatter to item space: grad[k] += sum_{i, p} [pi[p, i] == k] * wg[i, p] ----
    out_lane = lax.broadcasted_iota(jnp.int32, (1, d), 1)
    partial = jnp.zeros((1, d), jnp.float32)
    for k in range(d):
        gk = jnp.sum(jnp.where(idx == k, wg, 0.0), keepdims=True)       # (1, 1)
        partial = jnp.where(out_lane == k, gk, partial)
    grad_ref[...] += partial


def _pick_tile_n(n, max_tile=2048):
    """Tile the permutation axis: whole array if small, else a lane-aligned divisor."""
    if n <= max_tile:
        return n
    t = (max_tile // 128) * 128
    while t >= 128:
        if n % t == 0:
            return t
        t -= 128
    return n


def exact_gradient_estimator(log_theta, pi, f_all, *, tile_n=None):
    """Mirrors ExactGradientEstimator.forward. log_theta: (d,), pi: (d!, d), f_all: (d!,)."""
    d = log_theta.shape[0]
    n = pi.shape[0]
    tn = tile_n if tile_n is not None else _pick_tile_n(n)
    assert n % tn == 0

    # Permutation-lane-major int indices; no one-hot materialized in HBM.
    piT = jnp.transpose(pi.astype(jnp.int32))               # (d, N)
    f_row = f_all.reshape(1, n).astype(jnp.float32)         # (1, N)

    kernel = functools.partial(_exact_grad_kernel, d=d, tn=tn)
    grad2d, exp2d = pl.pallas_call(
        kernel,
        out_shape=(jax.ShapeDtypeStruct((1, d), jnp.float32),
                   jax.ShapeDtypeStruct((1, 1), jnp.float32)),
        grid=(n // tn,),
        in_specs=[pl.BlockSpec(memory_space=pltpu.MemorySpace.SMEM),   # log_theta, whole array
                  pl.BlockSpec((d, tn), lambda i: (0, i)),             # piT tile along N
                  pl.BlockSpec((1, tn), lambda i: (0, i))],            # f tile along N
        out_specs=(pl.BlockSpec((1, d), lambda i: (0, 0)),             # resident accumulator
                   pl.BlockSpec((1, 1), lambda i: (0, 0))),            # resident accumulator
        compiler_params=pltpu.CompilerParams(
            dimension_semantics=("arbitrary",)),
    )(log_theta.astype(jnp.float32), piT, f_row)
    return grad2d.reshape(d), exp2d.reshape(())


def make_permutation_matrix(pi, d):
    return (pi[:, :, None] == jnp.arange(d)[None, None, :]).astype(jnp.float32)


def f_synth(perm_mats, w):
    # Deterministic synthetic `f`: weighted overlap of each permutation matrix with w.
    return jnp.einsum('nij,ij->n', perm_mats, w)


if __name__ == "__main__":
    d = 5                                  # d! = 120 permutations
    key = jax.random.PRNGKey(0)
    k1, k2 = jax.random.split(key)
    log_theta = jax.random.normal(k1, (d,), dtype=jnp.float32)
    pi = jnp.asarray(list(permutations(range(d))), dtype=jnp.int32)      # (120, 5)

    perm_mats = make_permutation_matrix(pi, d)
    w_f = jax.random.normal(k2, (d, d), dtype=jnp.float32)
    f_all = f_synth(perm_mats, w_f)                                      # (120,)

    grad, expectation = exact_gradient_estimator(log_theta, pi, f_all)
    jax.block_until_ready((grad, expectation))

    # Reference (pure JAX autodiff) mirroring the torch log-derivative-trick forward.
    def logprob_fn(lt):
        s = lt[pi]
        m = jnp.max(s, axis=-1, keepdims=True)
        e = jnp.exp(s - m)
        tri = (jnp.arange(d)[:, None] >= jnp.arange(d)[None, :]).astype(jnp.float32)
        c = e @ tri
        return jnp.sum(s - (jnp.log(c) + m), axis=-1)

    def loss_fn(lt):
        lp = logprob_fn(lt)
        return jnp.sum(lax.stop_gradient(jnp.exp(lp)) * f_all * lp)

    ref_grad = jax.grad(loss_fn)(log_theta)
    ref_exp = jnp.sum(jnp.exp(logprob_fn(log_theta)) * f_all)

    assert jnp.allclose(grad, ref_grad, atol=1e-4, rtol=1e-4), (grad, ref_grad)
    assert jnp.allclose(expectation, ref_exp, atol=1e-4, rtol=1e-4), (expectation, ref_exp)
    print("KERNEL_OK")
</pallas_src>

<mosaic_0001>
module attributes {stable_mosaic.version = 11 : i64} {
  func.func @_exact_grad_kernel(%arg0: i32, %arg1: memref<5xf32, #tpu.memory_space<smem>>, %arg2: memref<5x120xi32, #tpu.memory_space<vmem>>, %arg3: memref<1x120xf32, #tpu.memory_space<vmem>>, %arg4: memref<1x5xf32, #tpu.memory_space<vmem>>, %arg5: memref<1x1xf32, #tpu.memory_space<vmem>>) attributes {dimension_semantics = [#tpu.dimension_semantics<arbitrary>], iteration_bounds = array<i64: 1>, scalar_prefetch = 0 : i64, scratch_operands = 0 : i64, tpu.core_type = #tpu.core_type<tc>, window_params = [{transform_indices = @transform_0, window_bounds = array<i64: 5>}, {transform_indices = @transform_1, window_bounds = array<i64: 5, 120>}, {transform_indices = @transform_2, window_bounds = array<i64: 1, 120>}, {pipeline_mode = #tpu.pipeline_mode<synchronous>, transform_indices = @transform_3, window_bounds = array<i64: 1, 5>}, {pipeline_mode = #tpu.pipeline_mode<synchronous>, transform_indices = @transform_4, window_bounds = array<i64: 1, 1>}]} {
    %c0_i32 = arith.constant 0 : i32
    %0 = arith.cmpi eq, %arg0, %c0_i32 : i32
    %1 = arith.extui %0 : i1 to i32
    %c0_i32_0 = arith.constant 0 : i32
    %2 = arith.cmpi ne, %1, %c0_i32_0 : i32
    scf.if %2 {
      %cst_42 = arith.constant 0.000000e+00 : f32
      %147 = vector.broadcast %cst_42 : f32 to vector<1x5xf32>
      %c0_43 = arith.constant 0 : index
      %c0_44 = arith.constant 0 : index
      %148 = vector.load %arg4[%c0_43, %c0_44] : memref<1x5xf32, #tpu.memory_space<vmem>>, vector<1x5xf32>
      tpu.vector_store %arg4[%c0_43, %c0_44], %147 {strides = array<i32>} : memref<1x5xf32, #tpu.memory_space<vmem>>, vector<1x5xf32>,
      %cst_45 = arith.constant 0.000000e+00 : f32
      %149 = vector.broadcast %cst_45 : f32 to vector<1x1xf32>
      %c0_46 = arith.constant 0 : index
      %c0_47 = arith.constant 0 : index
      %150 = vector.load %arg5[%c0_46, %c0_47] : memref<1x1xf32, #tpu.memory_space<vmem>>, vector<1x1xf32>
      tpu.vector_store %arg5[%c0_46, %c0_47], %149 {strides = array<i32>} : memref<1x1xf32, #tpu.memory_space<vmem>>, vector<1x1xf32>,
    } else {
    }
    %c0 = arith.constant 0 : index
    %c0_1 = arith.constant 0 : index
    %3 = vector.load %arg2[%c0, %c0_1] : memref<5x120xi32, #tpu.memory_space<vmem>>, vector<5x120xi32>
    %cst = arith.constant 0.000000e+00 : f32
    %4 = vector.broadcast %cst : f32 to vector<5x120xf32>
    %c0_i32_2 = arith.constant 0 : i32
    %5 = vector.broadcast %c0_i32_2 : i32 to vector<5x120xi32>
    %6 = arith.cmpi eq, %3, %5 : vector<5x120xi32>
    %c0_3 = arith.constant 0 : index
    %7 = memref.load %arg1[%c0_3] : memref<5xf32, #tpu.memory_space<smem>>
    %8 = vector.broadcast %7 : f32 to vector<5x120xf32>
    %9 = arith.select %6, %8, %4 : vector<5x120xi1>, vector<5x120xf32>
    %c1_i32 = arith.constant 1 : i32
    %10 = vector.broadcast %c1_i32 : i32 to vector<5x120xi32>
    %11 = arith.cmpi eq, %3, %10 : vector<5x120xi32>
    %c1 = arith.constant 1 : index
    %12 = memref.load %arg1[%c1] : memref<5xf32, #tpu.memory_space<smem>>
    %13 = vector.broadcast %12 : f32 to vector<5x120xf32>
    %14 = arith.select %11, %13, %9 : vector<5x120xi1>, vector<5x120xf32>
    %c2_i32 = arith.constant 2 : i32
    %15 = vector.broadcast %c2_i32 : i32 to vector<5x120xi32>
    %16 = arith.cmpi eq, %3, %15 : vector<5x120xi32>
    %c2 = arith.constant 2 : index
    %17 = memref.load %arg1[%c2] : memref<5xf32, #tpu.memory_space<smem>>
    %18 = vector.broadcast %17 : f32 to vector<5x120xf32>
    %19 = arith.select %16, %18, %14 : vector<5x120xi1>, vector<5x120xf32>
    %c3_i32 = arith.constant 3 : i32
    %20 = vector.broadcast %c3_i32 : i32 to vector<5x120xi32>
    %21 = arith.cmpi eq, %3, %20 : vector<5x120xi32>
    %c3 = arith.constant 3 : index
    %22 = memref.load %arg1[%c3] : memref<5xf32, #tpu.memory_space<smem>>
    %23 = vector.broadcast %22 : f32 to vector<5x120xf32>
    %24 = arith.select %21, %23, %19 : vector<5x120xi1>, vector<5x120xf32>
    %c4_i32 = arith.constant 4 : i32
    %25 = vector.broadcast %c4_i32 : i32 to vector<5x120xi32>
    %26 = arith.cmpi eq, %3, %25 : vector<5x120xi32>
    %c4 = arith.constant 4 : index
    %27 = memref.load %arg1[%c4] : memref<5xf32, #tpu.memory_space<smem>>
    %28 = vector.broadcast %27 : f32 to vector<5x120xf32>
    %29 = arith.select %26, %28, %24 : vector<5x120xi1>, vector<5x120xf32>
    %cst_4 = arith.constant dense<0xFF800000> : vector<120xf32>
    %30 = vector.multi_reduction <maximumf>, %29, %cst_4 [0] : vector<5x120xf32> to vector<120xf32>
    %31 = vector.shape_cast %30 : vector<120xf32> to vector<1x120xf32>
    %32 = vector.broadcast %31 : vector<1x120xf32> to vector<5x120xf32>
    %33 = arith.subf %29, %32 : vector<5x120xf32>
    %34 = math.exp %33 : vector<5x120xf32>
    %35 = tpu.iota {dimensions = array<i32: 0>} : vector<5x5xi32>
    %36 = tpu.iota {dimensions = array<i32: 1>} : vector<5x5xi32>
    %37 = arith.cmpi sge, %36, %35 : vector<5x5xi32>
    %38 = arith.extui %37 : vector<5x5xi1> to vector<5x5xi32>
    %39 = arith.sitofp %38 : vector<5x5xi32> to vector<5x5xf32>
    %40 = arith.cmpi sle, %36, %35 : vector<5x5xi32>
    %41 = arith.extui %40 : vector<5x5xi1> to vector<5x5xi32>
    %42 = arith.sitofp %41 : vector<5x5xi32> to vector<5x5xf32>
    %cst_5 = arith.constant dense<0.000000e+00> : vector<5x120xf32>
    %43 = tpu.matmul %39, %34, %cst_5 {dimension_numbers = #tpu.dot_dimension_numbers<[1], [0], [0], [1], [0, 0, 1, 1], [], []>} : vector<5x5xf32>, vector<5x120xf32>, vector<5x120xf32> -> vector<5x120xf32>
    %44 = math.log %43 : vector<5x120xf32>
    %45 = vector.broadcast %31 : vector<1x120xf32> to vector<5x120xf32>
    %46 = arith.addf %44, %45 : vector<5x120xf32>
    %47 = arith.subf %29, %46 : vector<5x120xf32>
    %cst_6 = arith.constant dense<0.000000e+00> : vector<120xf32>
    %48 = vector.multi_reduction <add>, %47, %cst_6 [0] : vector<5x120xf32> to vector<120xf32>
    %49 = vector.shape_cast %48 : vector<120xf32> to vector<1x120xf32>
    %50 = math.exp %49 : vector<1x120xf32>
    %c0_7 = arith.constant 0 : index
    %c0_8 = arith.constant 0 : index
    %51 = vector.load %arg3[%c0_7, %c0_8] : memref<1x120xf32, #tpu.memory_space<vmem>>, vector<1x120xf32>
    %52 = arith.mulf %50, %51 : vector<1x120xf32>
    %c0_9 = arith.constant 0 : index
    %c0_10 = arith.constant 0 : index
    %53 = vector.load %arg5[%c0_9, %c0_10] : memref<1x1xf32, #tpu.memory_space<vmem>>, vector<1x1xf32>
    %54 = vector.shape_cast %52 : vector<1x120xf32> to vector<1x1x120xf32>
    %cst_11 = arith.constant dense<0.000000e+00> : vector<1xf32>
    %55 = vector.multi_reduction <add>, %54, %cst_11 [1, 2] : vector<1x1x120xf32> to vector<1xf32>
    %56 = vector.shape_cast %55 : vector<1xf32> to vector<1x1x1xf32>
    %57 = vector.extract %56[0, 0, 0] : f32 from vector<1x1x1xf32>
    %58 = vector.broadcast %57 : f32 to vector<1x1xf32>
    %59 = arith.addf %53, %58 : vector<1x1xf32>
    %c0_12 = arith.constant 0 : index
    %c0_13 = arith.constant 0 : index
    %60 = vector.load %arg5[%c0_12, %c0_13] : memref<1x1xf32, #tpu.memory_space<vmem>>, vector<1x1xf32>
    tpu.vector_store %arg5[%c0_12, %c0_13], %59 {strides = array<i32>} : memref<1x1xf32, #tpu.memory_space<vmem>>, vector<1x1xf32>,
    %61 = tpu.reciprocal %43 {approx = true} : vector<5x120xf32> -> vector<5x120xf32>
    %62 = arith.mulf %43, %61 : vector<5x120xf32>
    %cst_14 = arith.constant 2.000000e+00 : f32
    %63 = vector.broadcast %cst_14 : f32 to vector<5x120xf32>
    %64 = arith.subf %63, %62 : vector<5x120xf32>
    %65 = arith.mulf %61, %64 : vector<5x120xf32>
    %cst_15 = arith.constant dense<0.000000e+00> : vector<5x120xf32>
    %66 = tpu.matmul %42, %65, %cst_15 {dimension_numbers = #tpu.dot_dimension_numbers<[1], [0], [0], [1], [0, 0, 1, 1], [], []>} : vector<5x5xf32>, vector<5x120xf32>, vector<5x120xf32> -> vector<5x120xf32>
    %67 = arith.mulf %34, %66 : vector<5x120xf32>
    %cst_16 = arith.constant 1.000000e+00 : f32
    %68 = vector.broadcast %cst_16 : f32 to vector<5x120xf32>
    %69 = arith.subf %68, %67 : vector<5x120xf32>
    %70 = vector.broadcast %52 : vector<1x120xf32> to vector<5x120xf32>
    %71 = arith.mulf %70, %69 : vector<5x120xf32>
    %72 = tpu.iota {dimensions = array<i32: 1>} : vector<1x5xi32>
    %cst_17 = arith.constant 0.000000e+00 : f32
    %73 = vector.broadcast %cst_17 : f32 to vector<1x5xf32>
    %c0_i32_18 = arith.constant 0 : i32
    %74 = vector.broadcast %c0_i32_18 : i32 to vector<5x120xi32>
    %75 = arith.cmpi eq, %3, %74 : vector<5x120xi32>
    %cst_19 = arith.constant 0.000000e+00 : f32
    %76 = vector.broadcast %cst_19 : f32 to vector<5x120xf32>
    %77 = arith.select %75, %71, %76 : vector<5x120xi1>, vector<5x120xf32>
    %78 = vector.shape_cast %77 : vector<5x120xf32> to vector<1x5x120xf32>
    %cst_20 = arith.constant dense<0.000000e+00> : vector<1xf32>
    %79 = vector.multi_reduction <add>, %78, %cst_20 [1, 2] : vector<1x5x120xf32> to vector<1xf32>
    %80 = vector.shape_cast %79 : vector<1xf32> to vector<1x1x1xf32>
    %81 = vector.extract %80[0, 0, 0] : f32 from vector<1x1x1xf32>
    %82 = vector.broadcast %81 : f32 to vector<1x1xf32>
    %c0_i32_21 = arith.constant 0 : i32
    %83 = vector.broadcast %c0_i32_21 : i32 to vector<1x5xi32>
    %84 = arith.cmpi eq, %72, %83 : vector<1x5xi32>
    %85 = vector.shape_cast %82 : vector<1x1xf32> to vector<1x1xf32>
    %86 = vector.broadcast %85 : vector<1x1xf32> to vector<1x5xf32>
    %87 = arith.select %84, %86, %73 : vector<1x5xi1>, vector<1x5xf32>
    %c1_i32_22 = arith.constant 1 : i32
    %88 = vector.broadcast %c1_i32_22 : i32 to vector<5x120xi32>
    %89 = arith.cmpi eq, %3, %88 : vector<5x120xi32>
    %cst_23 = arith.constant 0.000000e+00 : f32
    %90 = vector.broadcast %cst_23 : f32 to vector<5x120xf32>
    %91 = arith.select %89, %71, %90 : vector<5x120xi1>, vector<5x120xf32>
    %92 = vector.shape_cast %91 : vector<5x120xf32> to vector<1x5x120xf32>
    %cst_24 = arith.constant dense<0.000000e+00> : vector<1xf32>
    %93 = vector.multi_reduction <add>, %92, %cst_24 [1, 2] : vector<1x5x120xf32> to vector<1xf32>
    %94 = vector.shape_cast %93 : vector<1xf32> to vector<1x1x1xf32>
    %95 = vector.extract %94[0, 0, 0] : f32 from vector<1x1x1xf32>
    %96 = vector.broadcast %95 : f32 to vector<1x1xf32>
    %c1_i32_25 = arith.constant 1 : i32
    %97 = vector.broadcast %c1_i32_25 : i32 to vector<1x5xi32>
    %98 = arith.cmpi eq, %72, %97 : vector<1x5xi32>
    %99 = vector.shape_cast %96 : vector<1x1xf32> to vector<1x1xf32>
    %100 = vector.broadcast %99 : vector<1x1xf32> to vector<1x5xf32>
    %101 = arith.select %98, %100, %87 : vector<1x5xi1>, vector<1x5xf32>
    %c2_i32_26 = arith.constant 2 : i32
    %102 = vector.broadcast %c2_i32_26 : i32 to vector<5x120xi32>
    %103 = arith.cmpi eq, %3, %102 : vector<5x120xi32>
    %cst_27 = arith.constant 0.000000e+00 : f32
    %104 = vector.broadcast %cst_27 : f32 to vector<5x120xf32>
    %105 = arith.select %103, %71, %104 : vector<5x120xi1>, vector<5x120xf32>
    %106 = vector.shape_cast %105 : vector<5x120xf32> to vector<1x5x120xf32>
    %cst_28 = arith.constant dense<0.000000e+00> : vector<1xf32>
    %107 = vector.multi_reduction <add>, %106, %cst_28 [1, 2] : vector<1x5x120xf32> to vector<1xf32>
    %108 = vector.shape_cast %107 : vector<1xf32> to vector<1x1x1xf32>
    %109 = vector.extract %108[0, 0, 0] : f32 from vector<1x1x1xf32>
    %110 = vector.broadcast %109 : f32 to vector<1x1xf32>
    %c2_i32_29 = arith.constant 2 : i32
    %111 = vector.broadcast %c2_i32_29 : i32 to vector<1x5xi32>
    %112 = arith.cmpi eq, %72, %111 : vector<1x5xi32>
    %113 = vector.shape_cast %110 : vector<1x1xf32> to vector<1x1xf32>
    %114 = vector.broadcast %113 : vector<1x1xf32> to vector<1x5xf32>
    %115 = arith.select %112, %114, %101 : vector<1x5xi1>, vector<1x5xf32>
    %c3_i32_30 = arith.constant 3 : i32
    %116 = vector.broadcast %c3_i32_30 : i32 to vector<5x120xi32>
    %117 = arith.cmpi eq, %3, %116 : vector<5x120xi32>
    %cst_31 = arith.constant 0.000000e+00 : f32
    %118 = vector.broadcast %cst_31 : f32 to vector<5x120xf32>
    %119 = arith.select %117, %71, %118 : vector<5x120xi1>, vector<5x120xf32>
    %120 = vector.shape_cast %119 : vector<5x120xf32> to vector<1x5x120xf32>
    %cst_32 = arith.constant dense<0.000000e+00> : vector<1xf32>
    %121 = vector.multi_reduction <add>, %120, %cst_32 [1, 2] : vector<1x5x120xf32> to vector<1xf32>
    %122 = vector.shape_cast %121 : vector<1xf32> to vector<1x1x1xf32>
    %123 = vector.extract %122[0, 0, 0] : f32 from vector<1x1x1xf32>
    %124 = vector.broadcast %123 : f32 to vector<1x1xf32>
    %c3_i32_33 = arith.constant 3 : i32
    %125 = vector.broadcast %c3_i32_33 : i32 to vector<1x5xi32>
    %126 = arith.cmpi eq, %72, %125 : vector<1x5xi32>
    %127 = vector.shape_cast %124 : vector<1x1xf32> to vector<1x1xf32>
    %128 = vector.broadcast %127 : vector<1x1xf32> to vector<1x5xf32>
    %129 = arith.select %126, %128, %115 : vector<1x5xi1>, vector<1x5xf32>
    %c4_i32_34 = arith.constant 4 : i32
    %130 = vector.broadcast %c4_i32_34 : i32 to vector<5x120xi32>
    %131 = arith.cmpi eq, %3, %130 : vector<5x120xi32>
    %cst_35 = arith.constant 0.000000e+00 : f32
    %132 = vector.broadcast %cst_35 : f32 to vector<5x120xf32>
    %133 = arith.select %131, %71, %132 : vector<5x120xi1>, vector<5x120xf32>
    %134 = vector.shape_cast %133 : vector<5x120xf32> to vector<1x5x120xf32>
    %cst_36 = arith.constant dense<0.000000e+00> : vector<1xf32>
    %135 = vector.multi_reduction <add>, %134, %cst_36 [1, 2] : vector<1x5x120xf32> to vector<1xf32>
    %136 = vector.shape_cast %135 : vector<1xf32> to vector<1x1x1xf32>
    %137 = vector.extract %136[0, 0, 0] : f32 from vector<1x1x1xf32>
    %138 = vector.broadcast %137 : f32 to vector<1x1xf32>
    %c4_i32_37 = arith.constant 4 : i32
    %139 = vector.broadcast %c4_i32_37 : i32 to vector<1x5xi32>
    %140 = arith.cmpi eq, %72, %139 : vector<1x5xi32>
    %141 = vector.shape_cast %138 : vector<1x1xf32> to vector<1x1xf32>
    %142 = vector.broadcast %141 : vector<1x1xf32> to vector<1x5xf32>
    %143 = arith.select %140, %142, %129 : vector<1x5xi1>, vector<1x5xf32>
    %c0_38 = arith.constant 0 : index
    %c0_39 = arith.constant 0 : index
    %144 = vector.load %arg4[%c0_38, %c0_39] : memref<1x5xf32, #tpu.memory_space<vmem>>, vector<1x5xf32>
    %145 = arith.addf %144, %143 : vector<1x5xf32>
    %c0_40 = arith.constant 0 : index
    %c0_41 = arith.constant 0 : index
    %146 = vector.load %arg4[%c0_40, %c0_41] : memref<1x5xf32, #tpu.memory_space<vmem>>, vector<1x5xf32>
    tpu.vector_store %arg4[%c0_40, %c0_41], %145 {strides = array<i32>} : memref<1x5xf32, #tpu.memory_space<vmem>>, vector<1x5xf32>,
    return
  }
  func.func @transform_0(%arg0: i32) -> i32 {
    %c0_i32 = arith.constant 0 : i32
    %c0_i32_0 = arith.constant 0 : i32
    return %c0_i32 : i32
  }
  func.func @transform_1(%arg0: i32) -> (i32, i32) {
    %c0_i32 = arith.constant 0 : i32
    %c0_i32_0 = arith.constant 0 : i32
    return %c0_i32, %arg0 : i32, i32
  }
  func.func @transform_2(%arg0: i32) -> (i32, i32) {
    %c0_i32 = arith.constant 0 : i32
    %c0_i32_0 = arith.constant 0 : i32
    return %c0_i32, %arg0 : i32, i32
  }
  func.func @transform_3(%arg0: i32) -> (i32, i32) {
    %c0_i32 = arith.constant 0 : i32
    %c0_i32_0 = arith.constant 0 : i32
    %c0_i32_1 = arith.constant 0 : i32
    return %c0_i32, %c0_i32_0 : i32, i32
  }
  func.func @transform_4(%arg0: i32) -> (i32, i32) {
    %c0_i32 = arith.constant 0 : i32
    %c0_i32_0 = arith.constant 0 : i32
    %c0_i32_1 = arith.constant 0 : i32
    return %c0_i32, %c0_i32_0 : i32, i32
  }
}

</mosaic_0001>

<bundles_post_ra>
// kernel: tpu_custom_call.1
= control target key start
LH: loop header
LB: loop body
LE: loop exit
PB: predicated region body
PF: predicated region fallthrough
CT: control target
= control target key end

     0   :  { %10 = vsyncpa [#allocation5], 0  ;;  %s523_s0 = inlined_call_operand.hbm [shape: f32[5], index: 0, kind: input, shape index: {}]   ;;  %s524_s1 = inlined_call_operand.hbm [shape: s32[5,120], index: 1, kind: input, shape index: {}]   ;;  %s525_s2 = inlined_call_operand.vmem [shape: f32[1,120], index: 2, kind: input, shape index: {}]   ;;  %s526_s3 = inlined_call_operand.hbm [shape: f32[1,5], index: 3, kind: output, shape index: {0}]   ;;  %s527_s4 = inlined_call_operand.hbm [shape: f32[1,1], index: 4, kind: output, shape index: {1}]  }
   0x1   :  { %11 = vsyncpa [#allocation3], 0 }
   0x2   :  { %12 = vsyncpa [#allocation4], 0 }
   0x3   :  { %13 = vsyncpa [#allocation9], 0  ;;  %s19_s17 = sshll.u32 %s523_s0, 4  ;;  %s28_s20 = sshll.u32 %s524_s1, 4  ;;  %s20_s17 = int_to_ptr.hbm [resolvable:$true] %s19_s17  ;;  %s29_s20 = int_to_ptr.hbm [resolvable:$true] %s28_s20 }
   0x4   :  { %s423_s21 = smov [#allocation2]   ;;  %s424_s22 = smov [#allocation6]  }
   0x5   :  { %22 = dma.hbm_to_smem %s20_s17, 16, %s423_s21, [#allocation5]  }
   0x6   :  { %s30_s23 = sshll.u32 %s424_s22, 4  ;;  %s31_s23 = int_to_ptr.vmem [resolvable:$true] %s30_s23 }
   0x7   :  { %33 = dma.hbm_to_vmem [thread:$0]  %s29_s20, 128, %s31_s23, [#allocation3]  }
   0x8   :  { %415 = dma.done.wait [#allocation5], 16  }
   0x9   :  { %416 = vsyncadd [#allocation5], 4294967280 }
   0xa   :  { %417 = dma.done.wait [#allocation3], 128  }
   0xb   :  { %418 = vsyncadd [#allocation3], 4294967168 }
   0xc   :  { %44 = sfence }
   0xd   :  { %s55_s24 = sld [smem:[#allocation2]]  ;;  %v459_v0 = vld [vmem:[#allocation6] sm:$0x1f]  ;;  %vm74_vm5 = vcmask 978944   ;;  %v85_v18 = vlaneseq  ;;  %vm99_vm7 = vcmask 1044480   ;;  %v425_v23 = vmov 0.0  }
   0xe   :  { %s296_s0 = sld [smem:[#allocation2 + $0x1]]  ;;  %vm54_vm0 = vcmp.eq.s32.totalorder %v459_v0, 0  ;;  %vm58_vm1 = vcmp.eq.s32.totalorder %v459_v0, 1  ;;  %vm62_vm2 = vcmp.eq.s32.totalorder %v459_v0, 2  ;;  %vm66_vm3 = vcmp.eq.s32.totalorder %v459_v0, 3  ;;  %s280_s5 = sshll.u32 %s527_s4, 4  ;;  %s281_s5 = int_to_ptr.hbm [resolvable:$true] %s280_s5 }
   0xf   :  { %s297_s25 = sld [smem:[#allocation2 + $0x2]]  ;;  %vm70_vm4 = vcmp.eq.s32.totalorder %v459_v0, 4  ;;  %v86_v21 = vshrl.u32 %v85_v18, 7  ;;  %v477_v22 = vand.u32 127, %v85_v18  ;;  %vm95_vm8 = vcmask 39936   ;;  %s426_s6 = smov [#allocation8]  }
  0x10   :  { %s298_s26 = sld [smem:[#allocation2 + $0x3]]  ;;  %v136_v44 = vld [vmem:[%s525_s2] sm:$0x1]  ;;  %vm139_vm10 = vcmask 974848   ;;  %vm51_vm11 = vcmask 0   ;;  %s278_s7 = sshll.u32 %s426_s6, 4  ;;  %s279_s7 = int_to_ptr.vmem [resolvable:$true] %s278_s7 }
  0x11   :  { %s299_s1 = sld [smem:[#allocation2 + $0x4]]  ;;  %vm89_vm6 = vcmp.ge.s32.totalorder %v477_v22, %v86_v21  ;;  %vm92_vm9 = vcmp.le.s32.totalorder %v477_v22, %v86_v21  ;;  %52 = vst.msk [vmem:[#allocation8] sm:$0x1] %vm51_vm11, %v425_v23  ;;  %vm49_vm12 = vcmask 32768   ;;  %vm199_vm13 = vcmp.eq.s32.totalorder %v477_v22, 0  ;;  %s269_s13 = sshll.u32 %s526_s3, 4  ;;  %s270_s13 = int_to_ptr.hbm [resolvable:$true] %s269_s13 }
  0x12   :  { %v300_v24 = vsel %vm89_vm6, 1.0, %v425_v23  ;;  %v301_v35 = vsel %vm92_vm9, 1.0, %v425_v23  ;;  %50 = vst.msk [vmem:[#allocation7] sm:$0x1] %vm49_vm12, %v425_v23  ;;  %vm213_vm14 = vcmp.eq.s32.totalorder %v477_v22, 1  ;;  %vm227_vm15 = vcmp.eq.s32.totalorder %v477_v22, 2 }
  0x13   :  { %v56_v1 = vstv %s55_s24  ;;  %s427_s15 = smov [#allocation7]  }
  0x14   :  { %v57_v2 = vsel %vm54_vm0, %v56_v1, 0.0  ;;  %v60_v3 = vstv %s296_s0  ;;  %s267_s16 = sshll.u32 %s427_s15, 4  ;;  %s268_s16 = int_to_ptr.vmem [resolvable:$true] %s267_s16 }
  0x15   :  { %v61_v4 = vsel %vm58_vm1, %v60_v3, %v57_v2  ;;  %v64_v5 = vstv %s297_s25 }
  0x16   :  { %v65_v6 = vsel %vm62_vm2, %v64_v5, %v61_v4  ;;  %v68_v7 = vstv %s298_s26 }
  0x17   :  { %v69_v8 = vsel %vm66_vm3, %v68_v7, %v65_v6  ;;  %v72_v9 = vstv %s299_s1 }
  0x18   :  { %v73_v10 = vsel %vm70_vm4, %v72_v9, %v69_v8  ;;  %v138_v7 = vld [vmem:[#allocation8] sm:$0x1] }
  0x19   :  { %v75_v11 = vsel %vm74_vm5, %v73_v10, -inf }
  0x1a   :  { %v76_v12 = vrot.slane %v75_v11, 4 }
  0x1c   :  { %v77_v13 = vmax.f32 %v75_v11, %v76_v12 }
  0x1e   :  { %v78_v14 = vrot.slane %v77_v13, 2 }
  0x20   :  { %v79_v15 = vmax.f32 %v77_v13, %v78_v14 }
  0x22   :  { %v80_v16 = vrot.slane %v79_v15, 1 }
  0x24   :  { %v81_v17 = vmax.f32 %v79_v15, %v80_v16 }
  0x26   :  { %v82_v19 = vsub.f32 %v73_v10, %v81_v17 }
  0x28   :  { %v83_v20 = vmul.f32 1.442695, %v82_v19 }
  0x2a   :  { %323 = vpow2.f32 %v83_v20 }
  0x30   :  { %v324_v25 = vpop.eup %323 }
  0x31   :  { %302 = vmatpush.msk.msra.mxu0 %vm99_vm7, %v324_v25 }
  0x32   :  { %303 = vmatmul.msk.f32.vlgmr.msra.gmra.mxu0 %vm95_vm8, %v300_v24 }
  0xaf   :  { %v120_v26 = vpop.f32.mrf.mxu0 }
  0xb0   :  { %325 = vlog2.f32 %v120_v26 }
  0xb1   :  { %327 = vrcp.f32 %v120_v26 }
  0xb6   :  { %v326_v27 = vpop.eup %325 }
  0xb7   :  { %v328_v28 = vpop.eup %327  ;;  %v124_v29 = vmul.f32 0.6931472, %v326_v27 }
  0xb8   :  { %v155_v30 = vmul.f32 %v328_v28, %v120_v26 }
  0xb9   :  { %v125_v31 = vadd.f32 %v124_v29, %v81_v17 }
  0xba   :  { %v156_v32 = vsub.f32 2.0, %v155_v30 }
  0xbb   :  { %v126_v33 = vsub.f32 %v73_v10, %v125_v31 }
  0xbc   :  { %v157_v34 = vmul.f32 %v328_v28, %v156_v32 }
  0xbd   :  { %v127_v36 = vsel %vm74_vm5, %v126_v33, 0.0 }
  0xbe   :  { %v128_v37 = vrot.slane %v127_v36, 4  ;;  %304 = vmatpush.msk.msra.mxu1 %vm99_vm7, %v157_v34 }
  0xbf   :  { %305 = vmatmul.msk.f32.vlgmr.msra.gmra.mxu1 %vm95_vm8, %v301_v35 }
  0xc0   :  { %v129_v38 = vadd.f32 %v128_v37, %v127_v36 }
  0xc2   :  { %v130_v39 = vrot.slane %v129_v38, 2 }
  0xc4   :  { %v131_v40 = vadd.f32 %v130_v39, %v129_v38 }
  0xc6   :  { %v132_v41 = vrot.slane %v131_v40, 1 }
  0xc8   :  { %v133_v42 = vadd.f32 %v132_v41, %v131_v40 }
  0xca   :  { %v134_v43 = vmul.f32 1.442695, %v133_v42 }
  0xcc   :  { %329 = vpow2.f32 %v134_v43 }
  0xd2   :  { %v330_v45 = vpop.eup %329 }
  0xd3   :  { %v137_v46 = vmul.f32 %v330_v45, %v136_v44 }
  0xd5   :  { %v140_v47 = vsel %vm139_vm10, %v137_v46, 0.0  ;;  %v186_v50 = vperm.slane %v137_v46, 0 }
  0xd6   :  { %141 = vadd.xlane.f32.xlu0 %v140_v47 }
 0x13c   :  { %v181_v48 = vpop.f32.mrf.mxu1 }
 0x13d   :  { %v184_v49 = vmul.f32 %v324_v25, %v181_v48 }
 0x13f   :  { %v185_v51 = vsub.f32 1.0, %v184_v49 }
 0x141   :  { %v187_v52 = vmul.f32 %v186_v50, %v185_v51 }
 0x143   :  { %v230_v53 = vsel %vm66_vm3, %v187_v52, 0.0  ;;  %v202_v54 = vsel %vm58_vm1, %v187_v52, 0.0  ;;  %v188_v55 = vsel %vm54_vm0, %v187_v52, 0.0  ;;  %v244_v60 = vsel %vm70_vm4, %v187_v52, 0.0 }
 0x144   :  { %v231_v56 = vsel %vm74_vm5, %v230_v53, 0.0  ;;  %v203_v57 = vsel %vm74_vm5, %v202_v54, 0.0  ;;  %v189_v58 = vsel %vm74_vm5, %v188_v55, 0.0  ;;  %v216_v61 = vsel %vm62_vm2, %v187_v52, 0.0  ;;  %v258_v52 = vld [vmem:[#allocation7] sm:$0x1] }
 0x145   :  { %232 = vadd.xlane.f32.xlu2 %v231_v56  ;;  %204 = vadd.xlane.f32.xlu1 %v203_v57  ;;  %v245_v1 = vsel %vm74_vm5, %v244_v60, 0.0  ;;  %v217_v2 = vsel %vm74_vm5, %v216_v61, 0.0  ;;  %vm241_vm0 = vcmp.eq.s32.totalorder %v477_v22, 3  ;;  %vm255_vm1 = vcmp.eq.s32.totalorder %v477_v22, 4 }
 0x146   :  { %190 = vadd.xlane.f32.xlu0 %v189_v58 }
 0x149   :  { %v142_v59 = vpop.xlane.xlu0 %141 }
 0x14a   :  { %v143_v62 = vrot.slane %v142_v59, 4 }
 0x14c   :  { %v144_v63 = vadd.f32 %v143_v62, %v142_v59 }
 0x14d   :  { %246 = vadd.xlane.f32.xlu2 %v245_v1  ;;  %218 = vadd.xlane.f32.xlu1 %v217_v2 }
 0x14e   :  { %v145_v3 = vrot.slane %v144_v63, 2 }
 0x150   :  { %v146_v4 = vadd.f32 %v145_v3, %v144_v63 }
 0x152   :  { %v147_v5 = vrot.slane %v146_v4, 1 }
 0x154   :  { %v148_v6 = vadd.f32 %v147_v5, %v146_v4 }
 0x156   :  { %306 = vpush %v148_v6 }
 0x187   :  { %s307_s2 = spop %306 }
 0x188   :  { %v150_v8 = vstv %s307_s2 }
 0x189   :  { %v151_v0 = vadd.f32 %v150_v8, %v138_v7 }
 0x18b   :  { %153 = vst.msk [vmem:[#allocation8] sm:$0x1] %vm51_vm11, %v151_v0 }
 0x18c   :  { %283 = dma.vmem_to_hbm [thread:$0]  %s279_s7, 16, %s281_s5, [#allocation9]  }
 0x1b8   :  { %v233_v9 = vpop.xlane.xlu2 %232  ;;  %v205_v10 = vpop.xlane.xlu1 %204 }
 0x1b9   :  { %v234_v11 = vrot.slane %v233_v9, 4  ;;  %v206_v12 = vrot.slane %v205_v10, 4  ;;  %v191_v13 = vpop.xlane.xlu0 %190 }
 0x1ba   :  { %v192_v14 = vrot.slane %v191_v13, 4 }
 0x1bb   :  { %v207_v15 = vadd.f32 %v206_v12, %v205_v10  ;;  %v235_v16 = vadd.f32 %v234_v11, %v233_v9 }
 0x1bc   :  { %v193_v17 = vadd.f32 %v192_v14, %v191_v13 }
 0x1bd   :  { %v208_v18 = vrot.slane %v207_v15, 2  ;;  %v236_v21 = vrot.slane %v235_v16, 2 }
 0x1be   :  { %v194_v19 = vrot.slane %v193_v17, 2 }
 0x1bf   :  { %v209_v20 = vadd.f32 %v208_v18, %v207_v15  ;;  %v237_v35 = vadd.f32 %v236_v21, %v235_v16 }
 0x1c0   :  { %v195_v24 = vadd.f32 %v194_v19, %v193_v17  ;;  %v247_v25 = vpop.xlane.xlu2 %246  ;;  %v219_v26 = vpop.xlane.xlu1 %218 }
 0x1c1   :  { %v248_v27 = vrot.slane %v247_v25, 4  ;;  %v220_v28 = vrot.slane %v219_v26, 4  ;;  %v210_v29 = vrot.slane %v209_v20, 1  ;;  %v238_v40 = vrot.slane %v237_v35, 1 }
 0x1c2   :  { %v196_v30 = vrot.slane %v195_v24, 1 }
 0x1c3   :  { %v249_v31 = vadd.f32 %v248_v27, %v247_v25  ;;  %v221_v32 = vadd.f32 %v220_v28, %v219_v26  ;;  %v211_v33 = vadd.f32 %v210_v29, %v209_v20  ;;  %v239_v45 = vadd.f32 %v238_v40, %v237_v35 }
 0x1c4   :  { %v197_v34 = vadd.f32 %v196_v30, %v195_v24 }
 0x1c5   :  { %v250_v36 = vrot.slane %v249_v31, 2  ;;  %v222_v37 = vrot.slane %v221_v32, 2 }
 0x1c6   :  { %308 = vpush %v197_v34 }
 0x1c7   :  { %v251_v38 = vadd.f32 %v250_v36, %v249_v31  ;;  %v223_v39 = vadd.f32 %v222_v37, %v221_v32  ;;  %310 = vpush %v211_v33 }
 0x1c9   :  { %v224_v41 = vrot.slane %v223_v39, 1  ;;  %v252_v42 = vrot.slane %v251_v38, 1 }
 0x1cb   :  { %v225_v43 = vadd.f32 %v224_v41, %v223_v39  ;;  %v253_v44 = vadd.f32 %v252_v42, %v251_v38 }
 0x1cd   :  { %312 = vpush %v225_v43 }
 0x1ce   :  { %314 = vpush %v239_v45 }
 0x1cf   :  { %316 = vpush %v253_v44 }
 0x1f7   :  { %s309_s4 = spop %308 }
 0x1f8   :  { %v200_v46 = vstv %s309_s4  ;;  %s311_s8 = spop %310 }
 0x1f9   :  { %v201_v47 = vsel %vm199_vm13, %v200_v46, 0.0  ;;  %v214_v48 = vstv %s311_s8 }
 0x1fa   :  { %v215_v49 = vsel %vm213_vm14, %v214_v48, %v201_v47 }
 0x1fe   :  { %s313_s9 = spop %312 }
 0x1ff   :  { %v228_v50 = vstv %s313_s9  ;;  %s315_s10 = spop %314 }
 0x200   :  { %v229_v23 = vsel %vm227_vm15, %v228_v50, %v215_v49  ;;  %v242_v51 = vstv %s315_s10  ;;  %s317_s14 = spop %316 }
 0x201   :  { %v243_v53 = vsel %vm241_vm0, %v242_v51, %v229_v23  ;;  %v256_v54 = vstv %s317_s14 }
 0x202   :  { %v257_v55 = vsel %vm255_vm1, %v256_v54, %v243_v53 }
 0x203   :  { %v259_v56 = vadd.f32 %v258_v52, %v257_v55 }
 0x205   :  { %261 = vst.msk [vmem:[#allocation7] sm:$0x1] %vm49_vm12, %v259_v56 }
 0x206   :  { %272 = dma.vmem_to_hbm [thread:$0]  %s268_s16, 16, %s270_s13, [#allocation4]  }
 0x207   :  { %419 = dma.done.wait [#allocation4], 16  }
 0x208   :  { %420 = vsyncadd [#allocation4], 4294967280 }
 0x209   :  { %421 = dma.done.wait [#allocation9], 16  }
 0x20a   :  { %422 = vsyncadd [#allocation9], 4294967280 }
 0x20b   :  { %292 = vsyncpa [#allocation3], 1 }
 0x20c   :  { %293 = vsyncpa [#allocation4], 1 }
 0x20d   :  { %294 = vsyncpa [#allocation9], 1 }
 0x20e   :  { %295 = vsyncpa [#allocation5], 1 }

</bundles_post_ra>
